<compile_context>
chip_gen: v7x
topology: tpu7x:2x2x1
jax: 0.10.0
libtpu: 0.0.40
codegen_flags: <defaults>
</compile_context>

<pallas_src>
import jax
import jax.numpy as jnp
import numpy as np
from jax.experimental import pallas as pl
from jax.experimental.pallas import tpu as pltpu


def _round_up(x, m):
    return (x + m - 1) // m * m


def _hw_defaults():
    """Per-generation tiling defaults (tile rows, scoped VMEM, buffer depth)."""
    kind = ""
    try:
        kind = jax.devices()[0].device_kind.lower()
    except Exception:
        pass
    if "v7" in kind:
        # 64 MiB VMEM per TC: cap the row tile and scoped VMEM; rely on the
        # 2-TC megacore splitting the "parallel" row axis.
        return {"tile_rows": 1024, "vmem": 48 * 1024 * 1024, "buffers": 2}
    if "v6" in kind:
        return {"tile_rows": 2048, "vmem": 64 * 1024 * 1024, "buffers": 2}
    if "v5" in kind:
        # ~0.82 TB/s HBM: deepen streaming-input buffering to hide DMA tails.
        return {"tile_rows": 1024, "vmem": 64 * 1024 * 1024, "buffers": 3}
    return {"tile_rows": 1024, "vmem": 48 * 1024 * 1024, "buffers": 2}


def _pick_row_tiling(rows, desired):
    """Pick (tile_rows, padded_rows) preferring a tile that divides the rows
    (so no wrapper-side row padding / HBM copy is needed)."""
    desired = max(8, (desired // 8) * 8)
    rows8 = _round_up(rows, 8)
    if rows8 <= desired:
        return rows8, rows8                      # single tile, at most 7 pad rows
    t = desired
    while t >= 8:
        if rows8 % t == 0:
            break
        t -= 8
    if t >= max(8, desired // 2):
        return t, rows8                          # dividing tile, no row pad
    return desired, _round_up(rows, desired)     # fall back to padding rows


# ---------------------------------------------------------------------------
# Tiled MXU matmul (teacher classifier head): bf16 operands, f32 accumulation.
# ---------------------------------------------------------------------------
def _matmul_kernel(a_ref, b_ref, o_ref, acc_ref):
    @pl.when(pl.program_id(2) == 0)
    def _():
        acc_ref[...] = jnp.zeros_like(acc_ref)

    acc_ref[...] += jnp.dot(a_ref[...], b_ref[...],
                            preferred_element_type=jnp.float32)

    @pl.when(pl.program_id(2) == pl.num_programs(2) - 1)
    def _():
        o_ref[...] = acc_ref[...].astype(o_ref.dtype)


def pallas_matmul(a, b, *, tm=256, tn=256, tk=512):
    """C = A @ B with a tiled Pallas MXU kernel (bf16 operands, f32 acc)."""
    M, K = a.shape
    K2, N = b.shape
    assert K == K2
    a = a.astype(jnp.bfloat16)
    b = b.astype(jnp.bfloat16)

    tm = min(tm, _round_up(M, 8))
    tn = min(tn, _round_up(N, 128))
    tk = min(tk, _round_up(K, 128))
    Mp, Np, Kp = _round_up(M, tm), _round_up(N, tn), _round_up(K, tk)
    a = jnp.pad(a, ((0, Mp - M), (0, Kp - K)))   # zero K-pad is matmul-safe
    b = jnp.pad(b, ((0, Kp - K), (0, Np - N)))

    out = pl.pallas_call(
        _matmul_kernel,
        out_shape=jax.ShapeDtypeStruct((Mp, Np), jnp.float32),
        grid_spec=pltpu.PrefetchScalarGridSpec(
            num_scalar_prefetch=0,
            grid=(Mp // tm, Np // tn, Kp // tk),
            in_specs=[pl.BlockSpec((tm, tk), lambda i, j, k: (i, k)),
                      pl.BlockSpec((tk, tn), lambda i, j, k: (k, j))],
            out_specs=pl.BlockSpec((tm, tn), lambda i, j, k: (i, j)),
            scratch_shapes=[pltpu.VMEM((tm, tn), jnp.float32)]),
        compiler_params=pltpu.CompilerParams(
            dimension_semantics=("parallel", "parallel", "arbitrary"),
            vmem_limit_bytes=32 * 1024 * 1024),
    )(a, b)
    return out[:M, :N]


# ---------------------------------------------------------------------------
# In-kernel softmax helpers (all math in f32; v5e-safe).
# ---------------------------------------------------------------------------
def _log_softmax(x):
    m = jnp.max(x, axis=-1, keepdims=True)
    z = x - m
    return z - jnp.log(jnp.sum(jnp.exp(z), axis=-1, keepdims=True))


def _log_softmax_and_probs(x):
    """Teacher path: reuse exp(z) for the probabilities (EUP reciprocal)."""
    m = jnp.max(x, axis=-1, keepdims=True)
    z = x - m
    ez = jnp.exp(z)
    s = jnp.sum(ez, axis=-1, keepdims=True)
    return z - jnp.log(s), ez * pl.reciprocal(s, approx=True)


def _masked_log_softmax(x, valid):
    xm = jnp.where(valid, x, jnp.float32(-1e30))
    m = jnp.max(xm, axis=-1, keepdims=True)
    z = xm - m
    ez = jnp.where(valid, jnp.exp(z), 0.0)
    return z - jnp.log(jnp.sum(ez, axis=-1, keepdims=True))


def _masked_log_softmax_and_probs(x, valid):
    xm = jnp.where(valid, x, jnp.float32(-1e30))
    m = jnp.max(xm, axis=-1, keepdims=True)
    z = xm - m
    ez = jnp.where(valid, jnp.exp(z), 0.0)
    s = jnp.sum(ez, axis=-1, keepdims=True)
    return z - jnp.log(s), ez * pl.reciprocal(s, approx=True)


# ---------------------------------------------------------------------------
# Fused token-distillation kernel (row-tiled 1-D grid over B*L token rows).
# ---------------------------------------------------------------------------
def _make_token_loss_kernel(d_real, d_pad, mse_token):
    d_real = int(d_real)
    masked = int(d_pad) > d_real   # static: lane-mask path only for ragged D

    def kernel(s_tok_ref, t_act_ref, w_tok_ref, policy_ref, out_ref):
        s_tok = s_tok_ref[...].astype(jnp.float32)               # (T, Dp)
        # Fused teacher token-head projection on the MXU (bf16 x bf16 -> f32).
        t_tok = jnp.dot(t_act_ref[...], w_tok_ref[...],
                        preferred_element_type=jnp.float32)      # (T, Dp)
        # TODO(synk): the (T, 1) policy block is lane-padded in VMEM; packing
        # it into a spare padded lane (ragged D) or a lane-dense layout would
        # save a small masked DMA per step.
        mask_rows = (policy_ref[...] > 0.5).astype(jnp.float32)  # (T, 1)

        if masked:
            lane_d = jax.lax.broadcasted_iota(jnp.int32, s_tok.shape, 1)
            valid = lane_d < d_real
            lso = _masked_log_softmax(s_tok, valid)
            lto, pto = _masked_log_softmax_and_probs(t_tok, valid)
        else:
            # Fast path: D already a 128-lane multiple -> no lane masking.
            lso = _log_softmax(s_tok)
            lto, pto = _log_softmax_and_probs(t_tok)

        # pto is exactly 0 on padded lanes, so no extra where() is needed.
        kl_row = jnp.sum(pto * (lto - lso), axis=-1, keepdims=True)  # (T, 1)
        tok_kl = jnp.sum(kl_row * mask_rows)
        cnt = jnp.sum(mask_rows)

        # Lane-packed per-tile partials: lane 0 = KL sum, lane 1 = MSE sum,
        # lane 2 = kept-token count.
        lane_o = jax.lax.broadcasted_iota(jnp.int32, out_ref.shape, 2)
        contrib = (jnp.where(lane_o == 0, tok_kl, 0.0)
                   + jnp.where(lane_o == 2, cnt, 0.0))
        if mse_token:  # static flag: only emitted when used
            # Padded lanes are zero in both s_tok and t_tok -> diff is 0 there.
            diff = s_tok - t_tok
            mse_row = jnp.sum(diff * diff, axis=-1, keepdims=True)
            contrib = contrib + jnp.where(lane_o == 1,
                                          jnp.sum(mse_row * mask_rows), 0.0)
        out_ref[...] = contrib

    return kernel


# ---------------------------------------------------------------------------
# Python wrapper mirroring the PyTorch module's forward().
# ---------------------------------------------------------------------------
class DistillDiffPruningLossDynamic:
    # TODO(synk): ratio_weight / pruning_loc / keep_ratio / dynamic are stored
    # for interface parity but — exactly like the provided PyTorch forward —
    # are not used in the loss computation.
    # TODO(synk): base_criterion is hard-coded as mean one-hot cross-entropy;
    # label-smoothing / soft-label criteria are not modeled.

    def __init__(self, teacher, ratio_weight=2.0, distill_weight=0.5,
                 dynamic=False, pruning_loc=(3, 6, 9),
                 keep_ratio=(0.75, 0.5, 0.25), clf_weight=1.0,
                 mse_token=False, print_mode=True, token_tile_rows=None):
        self.teacher = teacher
        self.clf_weight = clf_weight
        self.distill_weight = distill_weight
        self.ratio_weight = ratio_weight
        self.pruning_loc = pruning_loc
        self.keep_ratio = keep_ratio
        self.mse_token = mse_token
        self.dynamic = dynamic
        self.print_mode = print_mode
        hw = _hw_defaults()
        self.token_tile_rows = (token_tile_rows if token_tile_rows is not None
                                else hw["tile_rows"])
        self.vmem_limit = hw["vmem"]
        self.input_buffers = hw["buffers"]

    def _stream_spec(self, shape, index_map):
        """BlockSpec for the big streaming inputs; deeper buffering on v5e."""
        if self.input_buffers != 2:
            try:
                return pl.BlockSpec(shape, index_map,
                                    pipeline_mode=pl.Buffered(self.input_buffers))
            except TypeError:
                pass  # older jax without pipeline_mode: fall back to default
        return pl.BlockSpec(shape, index_map)

    def __call__(self, inputs, outputs, labels):
        cls_s, other_t, policy, current_pos = outputs
        B, L, D = other_t.shape
        num_classes = cls_s.shape[1]

        # ---- teacher forward (frozen) -----------------------------------
        teacher_cls = self.teacher.classifier_logits(inputs)          # (B, C)
        feats = self.teacher.token_features(inputs)                   # (B, Lt, F)
        # Gather teacher token *features* at the student's kept positions and
        # cast to bf16 in the same fused XLA op (the per-token linear head
        # commutes with the gather and is applied inside the loss kernel).
        # TODO(synk): an in-kernel DMA gather (scalar-prefetched current_pos
        # + manual async copies) would remove this HBM round trip entirely,
        # but per-row DMAs are inefficient at small token_in.
        t_act = jnp.take_along_axis(
            feats, current_pos[:, :, None], axis=1).astype(jnp.bfloat16)

        # ---- class-level terms: tiny (B, C) math, plain JAX/XLA ----------
        ls = jax.nn.log_softmax(cls_s.astype(jnp.float32), axis=1)
        lt = jax.nn.log_softmax(teacher_cls.astype(jnp.float32), axis=1)
        onehot = jax.nn.one_hot(labels, num_classes, dtype=jnp.float32)
        cls_loss = jnp.mean(-jnp.sum(onehot * ls, axis=1))
        kl_loss = jnp.sum(jnp.exp(lt) * (lt - ls)) / B

        # ---- token-level distillation: row-tiled Pallas kernel -----------
        rows = B * L
        token_in = feats.shape[-1]
        d_p = _round_up(D, 128)
        tile_rows, rows_p = _pick_row_tiling(rows, self.token_tile_rows)
        n_tiles = rows_p // tile_rows

        s_tok = other_t.reshape(rows, D)
        t_act = t_act.reshape(rows, token_in)
        policy_col = policy.reshape(rows, 1).astype(jnp.float32)
        w_tok = self.teacher.w_tok
        if d_p > D:                                   # ragged D only
            s_tok = jnp.pad(s_tok, ((0, 0), (0, d_p - D)))
            w_tok = jnp.pad(w_tok, ((0, 0), (0, d_p - D)))
        if rows_p > rows:                             # only if no dividing tile
            s_tok = jnp.pad(s_tok, ((0, rows_p - rows), (0, 0)))
            t_act = jnp.pad(t_act, ((0, rows_p - rows), (0, 0)))
            policy_col = jnp.pad(policy_col, ((0, rows_p - rows), (0, 0)))
        w_tok = w_tok.astype(jnp.bfloat16)

        kernel = _make_token_loss_kernel(D, d_p, self.mse_token)
        partial = pl.pallas_call(
            kernel,
            out_shape=jax.ShapeDtypeStruct((n_tiles, 8, 128), jnp.float32),
            grid_spec=pltpu.PrefetchScalarGridSpec(
                num_scalar_prefetch=0,
                grid=(n_tiles,),
                in_specs=[
                    self._stream_spec((tile_rows, d_p), lambda r: (r, 0)),
                    self._stream_spec((tile_rows, token_in), lambda r: (r, 0)),
                    pl.BlockSpec((token_in, d_p), lambda r: (0, 0)),
                    pl.BlockSpec((tile_rows, 1), lambda r: (r, 0)),
                ],
                out_specs=pl.BlockSpec((1, 8, 128), lambda r: (r, 0, 0)),
            ),
            compiler_params=pltpu.CompilerParams(
                dimension_semantics=("parallel",),
                vmem_limit_bytes=self.vmem_limit),
        )(s_tok, t_act, w_tok, policy_col)

        sums = jnp.sum(partial[:, 0, :], axis=0)      # (128,) lane-packed
        tok_kl_sum, tok_mse_sum, tok_cnt = sums[0], sums[1], sums[2]

        safe_cnt = jnp.maximum(tok_cnt, 1.0)
        if self.mse_token:
            token_sel = tok_mse_sum / (safe_cnt * D)  # .mean() over (N, D)
        else:
            token_sel = tok_kl_sum / safe_cnt         # batchmean over N
        # PyTorch: `if bool_policy.sum() < 0.1: token_distill_loss = 0`
        token_distill_loss = jnp.where(tok_cnt < 0.1,
                                       jnp.float32(0.0), token_sel)

        loss = (self.clf_weight * cls_loss
                + self.distill_weight * (kl_loss + token_distill_loss))
        return loss, [self.clf_weight * cls_loss,
                      self.distill_weight * kl_loss,
                      self.distill_weight * token_distill_loss]


# ---------------------------------------------------------------------------
# Synthetic deterministic teacher (two linear heads).
# ---------------------------------------------------------------------------
class SyntheticTeacher:
    """Deterministic stand-in for the frozen teacher model."""

    def __init__(self, key, in_features, num_classes, l_teacher, token_in,
                 token_dim):
        k1, k2 = jax.random.split(key)
        self.w_cls = jax.random.normal(k1, (in_features, num_classes),
                                       jnp.float32) * 0.02
        self.w_tok = jax.random.normal(k2, (token_in, token_dim),
                                       jnp.float32) * 0.02
        self.l_teacher = l_teacher
        self.token_in = token_in
        self.token_dim = token_dim

    def classifier_logits(self, x):
        return pallas_matmul(x.reshape(x.shape[0], -1), self.w_cls)

    def token_features(self, x):
        return x.reshape(x.shape[0], self.l_teacher, self.token_in)

    def __call__(self, x):
        """Full teacher forward (used by the pure-JAX reference)."""
        B = x.shape[0]
        feats = self.token_features(x).reshape(B * self.l_teacher,
                                               self.token_in)
        t_tok = jnp.dot(feats.astype(jnp.bfloat16),
                        self.w_tok.astype(jnp.bfloat16),
                        preferred_element_type=jnp.float32)
        return (self.classifier_logits(x),
                t_tok.reshape(B, self.l_teacher, self.token_dim))


# ---------------------------------------------------------------------------
# Pure-JAX reference for correctness checking.
# ---------------------------------------------------------------------------
def reference_loss(inputs, outputs, labels, teacher,
                   clf_weight=1.0, distill_weight=0.5, mse_token=False):
    cls_s, other_t, policy, current_pos = outputs
    B, L, D = other_t.shape
    t_cls, t_tok = teacher(inputs)
    gathered = jnp.take_along_axis(t_tok, current_pos[:, :, None], axis=1)

    ls = jax.nn.log_softmax(cls_s, axis=1)
    lt = jax.nn.log_softmax(t_cls, axis=1)
    onehot = jax.nn.one_hot(labels, cls_s.shape[1])
    cls_loss = jnp.mean(-jnp.sum(onehot * ls, axis=1))
    kl_loss = jnp.sum(jnp.exp(lt) * (lt - ls)) / B

    s2 = other_t.reshape(B * L, D)
    t2 = gathered.reshape(B * L, D)
    mask = (policy.reshape(B * L) > 0.5).astype(jnp.float32)
    cnt = mask.sum()
    if mse_token:
        per_tok = jnp.sum((s2 - t2) ** 2, axis=1)
        tok = jnp.sum(per_tok * mask) / (jnp.maximum(cnt, 1.0) * D)
    else:
        lso = jax.nn.log_softmax(s2, axis=1)
        lto = jax.nn.log_softmax(t2, axis=1)
        per_tok = jnp.sum(jnp.exp(lto) * (lto - lso), axis=1)
        tok = jnp.sum(per_tok * mask) / jnp.maximum(cnt, 1.0)
    tok = jnp.where(cnt < 0.1, 0.0, tok)
    return clf_weight * cls_loss + distill_weight * (kl_loss + tok)


if __name__ == "__main__":
    B, C_in, H, W = 2, 4, 16, 16
    num_classes = 16
    L, L_teacher = 8, 16
    token_in = C_in * H * W // L_teacher  # 64

    key = jax.random.PRNGKey(0)
    keys = jax.random.split(key, 10)
    inputs = jax.random.normal(keys[0], (B, C_in, H, W), jnp.float32)   # NCHW
    cls_s = jax.random.normal(keys[1], (B, num_classes), jnp.float32)
    policy = jax.random.uniform(keys[2], (B, L), jnp.float32)
    current_pos = jax.random.randint(keys[3], (B, L), 0, L_teacher)
    labels = jax.random.randint(keys[4], (B,), 0, num_classes)

    def run_case(name, D, mse_token, tile_rows, k_oth, k_teach):
        other_t = jax.random.normal(k_oth, (B, L, D), jnp.float32)
        teacher = SyntheticTeacher(k_teach, C_in * H * W, num_classes,
                                   L_teacher, token_in, D)
        loss_mod = DistillDiffPruningLossDynamic(
            teacher, ratio_weight=2.0, distill_weight=0.5, clf_weight=1.0,
            mse_token=mse_token, token_tile_rows=tile_rows)
        outputs = (cls_s, other_t, policy, current_pos)
        loss, parts = loss_mod(inputs, outputs, labels)
        loss = jax.block_until_ready(loss)
        parts = [jax.block_until_ready(p) for p in parts]
        ref = jax.block_until_ready(
            reference_loss(inputs, outputs, labels, teacher,
                           clf_weight=1.0, distill_weight=0.5,
                           mse_token=mse_token))
        assert np.isfinite(float(loss)), name
        assert all(np.isfinite(float(p)) for p in parts), name
        # Tolerance covers the approx-reciprocal teacher probs + bf16 MXU path.
        np.testing.assert_allclose(np.asarray(loss), np.asarray(ref),
                                   rtol=2e-3, atol=2e-3, err_msg=name)

    # Ragged D (lane-masked path) with a small tile -> exercises the grid.
    run_case("kl_d32_tiled", D=32, mse_token=False, tile_rows=8,
             k_oth=keys[5], k_teach=keys[6])
    # Lane-aligned D (fast path, no lane mask), HW-default tiling (one tile).
    run_case("kl_d128_fast", D=128, mse_token=False, tile_rows=None,
             k_oth=keys[7], k_teach=keys[8])
    # MSE token-distillation branch.
    run_case("mse_d32", D=32, mse_token=True, tile_rows=8,
             k_oth=keys[5], k_teach=keys[6])

    print("KERNEL_OK")
</pallas_src>

<mosaic_0001>
module attributes {stable_mosaic.version = 11 : i64} {
  func.func @_matmul_kernel(%arg0: i32, %arg1: i32, %arg2: i32, %arg3: memref<8x512xbf16, #tpu.memory_space<vmem>>, %arg4: memref<512x128xbf16, #tpu.memory_space<vmem>>, %arg5: memref<8x128xf32, #tpu.memory_space<vmem>>, %arg6: memref<8x128xf32, #tpu.memory_space<vmem>>) attributes {dimension_semantics = [#tpu.dimension_semantics<parallel>, #tpu.dimension_semantics<parallel>, #tpu.dimension_semantics<arbitrary>], iteration_bounds = array<i64: 1, 1, 2>, scalar_prefetch = 0 : i64, scratch_operands = 1 : i64, tpu.core_type = #tpu.core_type<tc>, window_params = [{transform_indices = @transform_0, window_bounds = array<i64: 8, 512>}, {transform_indices = @transform_1, window_bounds = array<i64: 512, 128>}, {transform_indices = @transform_2, window_bounds = array<i64: 8, 128>}]} {
    %c0_i32 = arith.constant 0 : i32
    %0 = arith.cmpi eq, %arg2, %c0_i32 : i32
    %1 = arith.extui %0 : i1 to i32
    %c0_i32_0 = arith.constant 0 : i32
    %2 = arith.cmpi ne, %1, %c0_i32_0 : i32
    scf.if %2 {
      %cst_9 = arith.constant 0.000000e+00 : f32
      %12 = vector.broadcast %cst_9 : f32 to vector<8x128xf32>
      %c0_10 = arith.constant 0 : index
      %c0_11 = arith.constant 0 : index
      %13 = vector.load %arg6[%c0_10, %c0_11] : memref<8x128xf32, #tpu.memory_space<vmem>>, vector<8x128xf32>
      tpu.vector_store %arg6[%c0_10, %c0_11], %12 {strides = array<i32>} : memref<8x128xf32, #tpu.memory_space<vmem>>, vector<8x128xf32>,
    } else {
    }
    %c0 = arith.constant 0 : index
    %c0_1 = arith.constant 0 : index
    %3 = vector.load %arg6[%c0, %c0_1] : memref<8x128xf32, #tpu.memory_space<vmem>>, vector<8x128xf32>
    %c0_2 = arith.constant 0 : index
    %c0_3 = arith.constant 0 : index
    %4 = vector.load %arg3[%c0_2, %c0_3] : memref<8x512xbf16, #tpu.memory_space<vmem>>, vector<8x512xbf16>
    %c0_4 = arith.constant 0 : index
    %c0_5 = arith.constant 0 : index
    %5 = vector.load %arg4[%c0_4, %c0_5] : memref<512x128xbf16, #tpu.memory_space<vmem>>, vector<512x128xbf16>
    %cst = arith.constant dense<0.000000e+00> : vector<8x128xf32>
    %6 = tpu.matmul %4, %5, %cst {dimension_numbers = #tpu.dot_dimension_numbers<[1], [0], [0], [1], [0, 0, 1, 1], [], []>} : vector<8x512xbf16>, vector<512x128xbf16>, vector<8x128xf32> -> vector<8x128xf32>
    %7 = arith.addf %3, %6 : vector<8x128xf32>
    %c0_6 = arith.constant 0 : index
    %c0_7 = arith.constant 0 : index
    %8 = vector.load %arg6[%c0_6, %c0_7] : memref<8x128xf32, #tpu.memory_space<vmem>>, vector<8x128xf32>
    tpu.vector_store %arg6[%c0_6, %c0_7], %7 {strides = array<i32>} : memref<8x128xf32, #tpu.memory_space<vmem>>, vector<8x128xf32>,
    %c1_i32 = arith.constant 1 : i32
    %9 = arith.cmpi eq, %arg2, %c1_i32 : i32
    %10 = arith.extui %9 : i1 to i32
    %c0_i32_8 = arith.constant 0 : i32
    %11 = arith.cmpi ne, %10, %c0_i32_8 : i32
    scf.if %11 {
      %c0_9 = arith.constant 0 : index
      %c0_10 = arith.constant 0 : index
      %12 = vector.load %arg6[%c0_9, %c0_10] : memref<8x128xf32, #tpu.memory_space<vmem>>, vector<8x128xf32>
      %c0_11 = arith.constant 0 : index
      %c0_12 = arith.constant 0 : index
      %13 = vector.load %arg5[%c0_11, %c0_12] : memref<8x128xf32, #tpu.memory_space<vmem>>, vector<8x128xf32>
      tpu.vector_store %arg5[%c0_11, %c0_12], %12 {strides = array<i32>} : memref<8x128xf32, #tpu.memory_space<vmem>>, vector<8x128xf32>,
    } else {
    }
    return
  }
  func.func @transform_0(%arg0: i32, %arg1: i32, %arg2: i32) -> (i32, i32) {
    %c0_i32 = arith.constant 0 : i32
    return %arg0, %arg2 : i32, i32
  }
  func.func @transform_1(%arg0: i32, %arg1: i32, %arg2: i32) -> (i32, i32) {
    %c0_i32 = arith.constant 0 : i32
    return %arg2, %arg1 : i32, i32
  }
  func.func @transform_2(%arg0: i32, %arg1: i32, %arg2: i32) -> (i32, i32) {
    %c0_i32 = arith.constant 0 : i32
    return %arg0, %arg1 : i32, i32
  }
}

</mosaic_0001>

<bundles_post_ra>
// kernel: tpu_custom_call.1
= control target key start
LH: loop header
LB: loop body
LE: loop exit
PB: predicated region body
PF: predicated region fallthrough
CT: control target
= control target key end

     0   :  { %7 = vsyncpa [#allocation4], 0  ;;  %s1305_s0 = inlined_call_operand.hbm [shape: bf16[8,1024], index: 0, kind: input, shape index: {}]   ;;  %s1306_s1 = inlined_call_operand.hbm [shape: bf16[1024,128], index: 1, kind: input, shape index: {}]   ;;  %s1307_s2 = inlined_call_operand.hbm [shape: f32[8,128], index: 2, kind: output, shape index: {}]  }
   0x1   :  { %9 = vsyncpa [#allocation4 + $0x1], 0 }
   0x2   :  { %10 = vsyncpa [#allocation7], 0 }
   0x3   :  { %12 = vsyncpa [#allocation7 + $0x1], 0 }
   0x4   :  { %13 = vsyncpa [#allocation5], 0  ;;  %s1066_s9 = smov 0   ;;  %s1068_s10 = smov 0  }
   0x5   :  { %s1070_s11 = smov 0   ;;  %s1072_s12 = smov 0  }
   0x6   :  { %s1074_s13 = smov 0   ;;  %s1076_s14 = smov 0  }
   0x7 LB: > { %s693_s15 = sadd.s32 4294967295, %s1043_s14   ;;  %s31_s16 = sadd.s32 1, %s1039_s13  ;;  %s1043_s14 = sphi %s1076_s14, %s19_s14   ;;  %s1039_s13 = sphi %s1074_s13, %s1321_s13   ;;  %s1035_s12 = sphi %s1072_s12, %s1320_s12   ;;  %s1031_s11 = sphi %s1070_s11, %s1319_s11   ;;  %s1027_s10 = sphi %s1068_s10, %s1318_s10   ;;  %s1023_s9 = sphi %s1066_s9, %s1317_s9  }
   0x8   : > { %p32_p0 = scmp.ge.s32.totalorder %s31_s16, 2  ;;  %s47_s17 = sadd.s32 1, %s1031_s11 }
   0x9   : > { %p54_p1 = scmp.ne.s32.totalorder %s1031_s11, %s1027_s10  ;;  %p55_p2 = scmp.eq.s32.totalorder %s1043_s14, 0 }
   0xa   : > { %s1323_s16 = smov (%p32_p0, %s31_s16), 0  ;;  %p60_p4 = scmp.ne.s32.totalorder %s1027_s10, %s1023_s9 }
   0xb   : > { %p1102_p3 = por %p55_p2, %p54_p1  ;;  %s43_s19 = ssub.s32 %s1039_s13, %s1323_s16 }
   0xc   : > { %p61_p5 = scmp.eq.s32.totalorder %s693_s15, 0  ;;  %p45_p6 = scmp.eq.s32.totalorder %s43_s19, 0 }
   0xd   : > { %p808_p8 = scmp.lt.s32.totalorder %s1043_s14, 2  ;;  %s1120_s22 = sand.u32 1, %s1031_s11  }
   0xe   : > { %p1111_p7 = por %p61_p5, %p60_p4  ;;  %s747_s23 = sshll.u32 %s1039_s13, 8 }
   0xf   : > { %s1117_s21 = scalar_select %p45_p6, %s1031_s11, %s47_s17  }
  0x10   : > { %s1310_s20 = scalar_select %p1111_p7, 1, 0 }
  0x11   : > { %s696_s24 = sshll.u32 %s1120_s22, 4  ;;  %s1127_s27 = scalar_lea.hbm %s1305_s0, %s747_s23 }
  0x12   : > { %s144_s28 = scalar_lea.vmem [#allocation3], %s696_s24  ;;  %p1131_p9 = pnand %p808_p8, %p1102_p3 }
  0x13   : > { %s154_s29 = sshll.u32 %s144_s28, 4  ;;  %s141_s3 = scalar_lea.sflag [#allocation4], %s1120_s22  ;;  %s1135_s29 = int_to_ptr.vmem [resolvable:$true] %s154_s29 }
  0x14   : > { %s899_s4 = scalar_lea.hbm %s1127_s27, 256  ;;  %p901_p13 = pneg %p1131_p9 }
  0x15   : > { %p900_p12 = scmp.ne.s32.totalorder %s1127_s27, %s899_s4  ;;  %s904_s7 = scalar_lea.hbm %s1305_s0, 512 }
  0x16   : > { %p905_p2 = scmp.lt.u32.totalorder %s1127_s27, %s1305_s0  ;;  %p906_p3 = scmp.lt.u32.totalorder %s904_s7, %s899_s4 }
  0x17   : > { %p902_p0 = pnand %p901_p13, %p900_p12  ;;  %p908_p5 = scmp.lt.u32.totalorder %s899_s4, %s1127_s27 }
  0x18   : > { %p907_p4 = por %p906_p3, %p905_p2 }
  0x19   : > { %p903_p1 = pneg %p902_p0 }
  0x1a   : > { %p909_p6 = por %p908_p5, %p907_p4 }
  0x1c   : > { %p910_p8 = pnand %p909_p6, %p903_p1 }
  0x1e   : > { %913 = shalt.err (!%p910_p8)
}
  0x1f   : > { %s914_s17 = scalar_lea.vmem %s1135_s29, 256  ;;  %s1045_s18 = smov [#allocation3]  }
  0x20   : > { %p915_p12 = scmp.ne.s32.totalorder %s1135_s29, %s914_s17  ;;  %s919_s19 = sshll.u32 %s1045_s18, 4  ;;  %s920_s19 = int_to_ptr.vmem [resolvable:$false] %s919_s19 }
  0x21   : > { %s921_s23 = scalar_lea.vmem %s920_s19, 512  ;;  %p922_p11 = scmp.lt.s32.totalorder %s1135_s29, %s920_s19 }
  0x22   : > { %p917_p0 = pnand %p915_p12, %p901_p13  ;;  %p923_p2 = scmp.lt.s32.totalorder %s921_s23, %s914_s17 }
  0x24   : > { %p918_p10 = pneg %p917_p0  ;;  %p924_p3 = por %p923_p2, %p922_p11 }
  0x26   : > { %p925_p4 = pnand %p924_p3, %p918_p10 }
  0x28   : > { %928 = shalt.err (!%p925_p4)
}
  0x29   : > { %804 = dma.hbm_to_vmem [thread:$0]  (!%p1131_p9), %s1127_s27, 256, %s1135_s29, %s141_s3  }
  0x2a   : > { %p1312_p1 = scmp.lt.s32.totalorder %s1043_s14, 3  ;;  %p1313_p5 = scmp.ge.s32.totalorder %s1043_s14, 1 }
  0x2b   : > { %s699_s25 = sshll.u32 %s1120_s22, 8  ;;  %s748_s26 = sshll.u32 %s1039_s13, 12 }
  0x2c   : > { %p1169_p6 = pnand %p1313_p5, %p1312_p1  ;;  %s1178_s5 = scalar_lea.hbm %s1306_s1, %s748_s26 }
  0x2d   : > { %s165_s6 = scalar_lea.vmem [#allocation6], %s699_s25  ;;  %s162_s27 = scalar_lea.sflag [#allocation7], %s1120_s22 }
  0x2e   : > { %s173_s7 = sshll.u32 %s165_s6, 4  ;;  %s929_s29 = scalar_lea.hbm %s1178_s5, 4096  ;;  %s1180_s7 = int_to_ptr.vmem [resolvable:$true] %s173_s7 }
  0x2f   : > { %p930_p10 = scmp.ne.s32.totalorder %s1178_s5, %s929_s29  ;;  %s934_s9 = scalar_lea.hbm %s1306_s1, 8192 }
  0x30   : > { %p935_p12 = scmp.lt.u32.totalorder %s1178_s5, %s1306_s1  ;;  %p936_p0 = scmp.lt.u32.totalorder %s934_s9, %s929_s29 }
  0x31   : > { %p932_p11 = pnand %p930_p10, %p901_p13  ;;  %p938_p3 = scmp.lt.u32.totalorder %s929_s29, %s1178_s5 }
  0x32   : > { %p937_p2 = por %p936_p0, %p935_p12 }
  0x33   : > { %p933_p8 = pneg %p932_p11 }
  0x34   : > { %p939_p4 = por %p938_p3, %p937_p2 }
  0x36   : > { %p940_p1 = pnand %p939_p4, %p933_p8 }
  0x38   : > { %943 = shalt.err (!%p940_p1)
}
  0x39   : > { %s944_s19 = scalar_lea.vmem %s1180_s7, 4096  ;;  %s1046_s23 = smov [#allocation6]  }
  0x3a   : > { %p945_p5 = scmp.ne.s32.totalorder %s1180_s7, %s944_s19  ;;  %s949_s25 = sshll.u32 %s1046_s23, 4  ;;  %s950_s25 = int_to_ptr.vmem [resolvable:$false] %s949_s25 }
  0x3b   : > { %s951_s26 = scalar_lea.vmem %s950_s25, 8192  ;;  %p952_p7 = scmp.lt.s32.totalorder %s1180_s7, %s950_s25 }
  0x3c   : > { %p947_p10 = pnand %p945_p5, %p901_p13  ;;  %p953_p12 = scmp.lt.s32.totalorder %s951_s26, %s944_s19 }
  0x3e   : > { %p948_p11 = pneg %p947_p10  ;;  %p954_p0 = por %p953_p12, %p952_p7 }
  0x40   : > { %p955_p2 = pnand %p954_p0, %p948_p11 }
  0x42   : > { %958 = shalt.err (!%p955_p2)
}
  0x43   : > { %s1047_s28 = smov 64   ;;  %s1048_s4 = smov 4  }
  0x44   : > { %807 = dma.hbm_to_vmem [thread:$0]  (!%p1131_p9), %s1178_s5, 4096, %s1180_s7, %s162_s27, %s1047_s28, %s1047_s28, %s1048_s4  }
  0x45   : > { %185 = sbr.rel (%p1169_p6) target bundleno = 377 (0x179), region = 28  ;;  %s187_s6 = sand.u32 (!%p1169_p6), 1, %s1027_s10  }
  0x46   : > { %s703_s29 = sshll.u32 (!%p1169_p6), %s187_s6, 4  ;;  %s188_s3 = scalar_lea.sflag (!%p1169_p6), [#allocation4], %s187_s6 }
  0x47   : > { %s1211_s8 = scalar_lea.vmem (!%p1169_p6), [#allocation3], %s703_s29  ;;  %p1315_p7 = scmp.ne.s32.totalorder (!%p1169_p6), %s1310_s20, 0 }
  0x4c   : > { %1010 = dma.done.wait (%p1315_p7), %s188_s3, 256  }
  0x4d   : > { %1012 = vsyncadd (%p1315_p7), %s188_s3, 4294967040  ;;  %s704_s9 = sshll.u32 %s187_s6, 8  ;;  %s197_s30 = scalar_lea.sflag [#allocation7], %s187_s6 }
  0x4e   : > { %s1217_s22 = scalar_lea.vmem [#allocation6], %s704_s9 }
  0x4f   : > { %1014 = dma.done.wait (%p1315_p7), %s197_s30, 4096  }
  0x50   : > { %1016 = vsyncadd (%p1315_p7), %s197_s30, 4294963200  ;;  %p705_p9 = scmp.ne.s32.totalorder %s1035_s12, 0 }
  0x51   : > { %v1049_v0 = vmov (!%p705_p9), 0.0  }
  0x52   : > { %227 = sbr.rel (%p705_p9) target bundleno = 89 (0x59), region = 40  ;;  %228 = vst [vmem:[#allocation2] sm:$0xff] (!%p705_p9), %v1049_v0 }
  0x59 PF: > { %v863_v1 = vld [vmem:[%s1217_s22 + $0x40] sm:$0xff]   ;;  %v867_v5 = vld [vmem:[%s1217_s22 + $0x48] sm:$0xff]   ;;  %v871_v9 = vld [vmem:[%s1217_s22 + $0x50] sm:$0xff]   ;;  %p742_p13 = scmp.ne.s32.totalorder %s1035_s12, 1 }
  0x5a   : > { %v864_v2 = vld [vmem:[%s1217_s22 + $0xc0] sm:$0xff]   ;;  %749 = vmatprep.subr.bf16.mxu0 %v863_v1  ;;  %v868_v6 = vld [vmem:[%s1217_s22 + $0xc8] sm:$0xff]   ;;  %v872_v10 = vld [vmem:[%s1217_s22 + $0xd0] sm:$0xff]  }
  0x5b   : > { %v865_v3 = vld [vmem:[%s1217_s22] sm:$0xff]   ;;  %771 = vmatprep.subr.bf16.mxu1 %v864_v2  ;;  %v869_v7 = vld [vmem:[%s1217_s22 + $0x8] sm:$0xff]   ;;  %v873_v11 = vld [vmem:[%s1217_s22 + $0x10] sm:$0xff]  }
  0x5c   : > { %v866_v4 = vld [vmem:[%s1217_s22 + $0x80] sm:$0xff]   ;;  %750 = vmatpush3.bf16.msra.mxu0 %v865_v3  ;;  %v870_v8 = vld [vmem:[%s1217_s22 + $0x88] sm:$0xff]   ;;  %v874_v12 = vld [vmem:[%s1217_s22 + $0x90] sm:$0xff]  }
  0x5d   : > { %772 = vmatpush3.bf16.msra.mxu1 %v866_v4  ;;  %751 = vmatprep.subr.bf16.mxu0 %v867_v5  ;;  %v875_v13 = vld [vmem:[%s1217_s22 + $0x58] sm:$0xff]   ;;  %v879_v17 = vld [vmem:[%s1217_s22 + $0x60] sm:$0xff]   ;;  %v883_v21 = vld [vmem:[%s1217_s22 + $0x68] sm:$0xff]  }
  0x5e   : > { %773 = vmatprep.subr.bf16.mxu1 %v868_v6  ;;  %v876_v14 = vld [vmem:[%s1217_s22 + $0xd8] sm:$0xff]   ;;  %v880_v18 = vld [vmem:[%s1217_s22 + $0xe0] sm:$0xff]   ;;  %v884_v22 = vld [vmem:[%s1217_s22 + $0xe8] sm:$0xff]  }
  0x5f   : > { %v877_v15 = vld [vmem:[%s1217_s22 + $0x18] sm:$0xff]   ;;  %v881_v19 = vld [vmem:[%s1217_s22 + $0x20] sm:$0xff]   ;;  %v885_v23 = vld [vmem:[%s1217_s22 + $0x28] sm:$0xff]  }
  0x60   : > { %752 = vmatpush3.bf16.msra.mxu0 %v869_v7  ;;  %v878_v16 = vld [vmem:[%s1217_s22 + $0x98] sm:$0xff]   ;;  %v882_v20 = vld [vmem:[%s1217_s22 + $0xa0] sm:$0xff]   ;;  %v886_v24 = vld [vmem:[%s1217_s22 + $0xa8] sm:$0xff]  }
  0x61   : > { %774 = vmatpush3.bf16.msra.mxu1 %v870_v8  ;;  %753 = vmatprep.subr.bf16.mxu0 %v871_v9  ;;  %v887_v25 = vld [vmem:[%s1217_s22 + $0x70] sm:$0xff]   ;;  %v891_v29 = vld [vmem:[%s1217_s22 + $0x78] sm:$0xff]  }
  0x62   : > { %775 = vmatprep.subr.bf16.mxu1 %v872_v10  ;;  %v888_v26 = vld [vmem:[%s1217_s22 + $0xf0] sm:$0xff]   ;;  %v892_v30 = vld [vmem:[%s1217_s22 + $0xf8] sm:$0xff]  }
  0x63   : > { %v889_v27 = vld [vmem:[%s1217_s22 + $0x30] sm:$0xff]   ;;  %v893_v31 = vld [vmem:[%s1217_s22 + $0x38] sm:$0xff]  }
  0x64   : > { %754 = vmatpush3.bf16.msra.mxu0 %v873_v11  ;;  %v890_v28 = vld [vmem:[%s1217_s22 + $0xb0] sm:$0xff]   ;;  %v894_v32 = vld [vmem:[%s1217_s22 + $0xb8] sm:$0xff]  }
  0x65   : > { %776 = vmatpush3.bf16.msra.mxu1 %v874_v12  ;;  %755 = vmatprep.subr.bf16.mxu0 %v875_v13  ;;  %v230_v33 = vld [vmem:[%s1211_s8] sm:$0xff]  ;;  %v231_v34 = vld [vmem:[%s1211_s8 + $0x8] sm:$0xff] }
  0x66   : > { %777 = vmatprep.subr.bf16.mxu1 %v876_v14  ;;  %v706_v35 = vcombine.low %v230_v33, %v230_v33  ;;  %v707_v36 = vcombine.high %v230_v33, %v230_v33  ;;  %v708_v37 = vcombine.low %v231_v34, %v231_v34  ;;  %v709_v38 = vcombine.high %v231_v34, %v231_v34  ;;  %v229_v47 = vld [vmem:[#allocation2] sm:$0xff] }
  0x68   : > { %756 = vmatpush3.bf16.msra.mxu0 %v877_v15  ;;  %534 = vmatprep.mubr.bf16.mxu0 %v707_v36 }
  0x69   : > { %778 = vmatpush3.bf16.msra.mxu1 %v878_v16  ;;  %757 = vmatprep.subr.bf16.mxu0 %v879_v17 }
  0x6a   : > { %779 = vmatprep.subr.bf16.mxu1 %v880_v18  ;;  %574 = vmatprep.mubr.bf16.mxu1 %v709_v38 }
  0x6c   : > { %758 = vmatpush3.bf16.msra.mxu0 %v881_v19 }
  0x6d   : > { %780 = vmatpush3.bf16.msra.mxu1 %v882_v20  ;;  %759 = vmatprep.subr.bf16.mxu0 %v883_v21 }
  0x6e   : > { %781 = vmatprep.subr.bf16.mxu1 %v884_v22 }
  0x70   : > { %760 = vmatpush3.bf16.msra.mxu0 %v885_v23 }
  0x71   : > { %782 = vmatpush3.bf16.msra.mxu1 %v886_v24  ;;  %761 = vmatprep.subr.bf16.mxu0 %v887_v25 }
  0x72   : > { %783 = vmatprep.subr.bf16.mxu1 %v888_v26 }
  0x74   : > { %762 = vmatpush3.bf16.msra.mxu0 %v889_v27 }
  0x75   : > { %784 = vmatpush3.bf16.msra.mxu1 %v890_v28  ;;  %763 = vmatprep.subr.bf16.mxu0 %v891_v29 }
  0x76   : > { %785 = vmatprep.subr.bf16.mxu1 %v892_v30 }
  0x78   : > { %764 = vmatpush3.bf16.msra.mxu0 %v893_v31 }
  0x79   : > { %786 = vmatpush3.bf16.msra.mxu1 %v894_v32 }
  0x7b   : > { %535 = vmatmul.mubr.bf16.vlgmr.msra.gmra.mrb[0].mxu0 %v706_v35 }
  0x7c   : > { %575 = vmatmul.mubr.bf16.vlgmr.msra.gmra.mrb[0].mxu1 %v708_v37 }
 0x14e   : > { %v765_v39 = vpop.f32.mrb[0].mxu0 }
 0x14f   : > { %v787_v40 = vpop.f32.mrb[0].mxu1  ;;  %v766_v41 = vpop.f32.mrb[1].mxu0 }
 0x150   : > { %v788_v42 = vpop.f32.mrb[1].mxu1  ;;  %v767_v43 = vadd.f32 %v766_v41, %v765_v39  ;;  %v768_v45 = vpop.f32.mrb[2].mxu0 }
 0x151   : > { %v789_v44 = vadd.f32 %v788_v42, %v787_v40  ;;  %v790_v46 = vpop.f32.mrb[2].mxu1  ;;  %v769_v48 = vpop.f32.mrb[3].mxu0  ;;  %587 = sbr.rel (%p742_p13) target bundleno = 352 (0x160), region = 44 }
 0x152   : > { %v791_v49 = vpop.f32.mrb[3].mxu1 }
 0x153   : > { %v577_v50 = vadd.f32 %v789_v44, %v767_v43 }
 0x155   : > { %v582_v51 = vadd.f32 %v577_v50, %v229_v47 }
 0x157   : > { %583 = vst [vmem:[#allocation2] sm:$0xff] %v582_v51 }
 0x15e   : > { %v588_v52 = vld [vmem:[#allocation2] sm:$0xff] }
 0x15f   : > { %589 = vst [vmem:[#allocation8] sm:$0xff] %v588_v52 }
 0x160 PF: > { %p1261_p6 = scmp.eq.s32.totalorder %s693_s15, 1  ;;  %s1050_s24 = smov [#allocation8]  }
 0x161   : > { %s600_s5 = sshll.u32 %s1050_s24, 4  ;;  %s601_s5 = int_to_ptr.vmem [resolvable:$true] %s600_s5 }
 0x162   : > { %s959_s7 = scalar_lea.vmem %s601_s5, 128  ;;  %p966_p1 = scmp.lt.s32.totalorder %s601_s5, %s601_s5 }
 0x163   : > { %p960_p8 = scmp.ne.s32.totalorder %s601_s5, %s959_s7  ;;  %p967_p5 = scmp.lt.s32.totalorder %s959_s7, %s959_s7 }
 0x165   : > { %p961_p3 = pnand %p960_p8, %p1261_p6  ;;  %p968_p10 = por %p967_p5, %p966_p1 }
 0x167   : > { %p962_p4 = pneg %p961_p3 }
 0x169   : > { %p969_p11 = pnand %p968_p10, %p962_p4 }
 0x16b   : > { %972 = shalt.err (!%p969_p11)
}
 0x16c   : > { %s973_s15 = scalar_lea.hbm %s1307_s2, 128 }
 0x16d   : > { %p974_p12 = scmp.ne.s32.totalorder %s1307_s2, %s973_s15  ;;  %p979_p7 = scmp.lt.u32.totalorder %s973_s15, %s1307_s2 }
 0x16f   : > { %p975_p0 = pnand %p974_p12, %p1261_p6 }
 0x171   : > { %p976_p2 = pneg %p975_p0 }
 0x173   : > { %p981_p9 = pnand %p979_p7, %p976_p2 }
 0x175   : > { %984 = shalt.err (!%p981_p9)
}
 0x176   : > { %798 = dma.vmem_to_hbm [thread:$0]  (%p1261_p6), %s601_s5, 128, %s1307_s2, [#allocation5]  }
 0x177   : > { %1018 = dma.done.wait (%p1261_p6), [#allocation5], 128  }
 0x178   : > { %1020 = vsyncadd (%p1261_p6), [#allocation5], 4294967168 }
 0x179 PF: > { %s19_s14 = sadd.s32 1, %s1043_s14   ;;  %s1317_s9 = smov %s1027_s10 }
 0x17a   : > { %p16_p13 = scmp.ge.s32.totalorder %s19_s14, 4   ;;  %s1318_s10 = smov %s1031_s11 }
 0x17b   : > { %s1319_s11 = smov %s1117_s21  ;;  %s1320_s12 = smov %s1039_s13 }
 0x17c   : > { %s1321_s13 = smov %s1323_s16  ;;  %18 = sbr.rel (!%p16_p13) target bundleno = 7 (0x7), region = 87 }
 0x183   :  { %613 = vsyncpa [#allocation4], 1 }
 0x184   :  { %615 = vsyncpa [#allocation4 + $0x1], 1 }
 0x185   :  { %616 = vsyncpa [#allocation7], 1 }
 0x186   :  { %618 = vsyncpa [#allocation7 + $0x1], 1 }
 0x187   :  { %619 = vsyncpa [#allocation5], 1 }
 0x188   :  { %621 = vsyncpa [#allocation5 + $0x1], 1 }

</bundles_post_ra>
